<compile_context>
chip_gen: v6e
topology: v6e:2x2x1
jax: 0.10.0
libtpu: 0.0.40
codegen_flags: <defaults>
</compile_context>

<pallas_src>
import functools

import jax
import jax.numpy as jnp
from jax.experimental import pallas as pl
from jax.experimental.pallas import tpu as pltpu

BN_EPS = 1e-5
LEAKY_SLOPE = 0.01
LANE = 128


def _round_up(x, m):
    return (x + m - 1) // m * m


# --------------------------------------------------------------------------
# Kernel
# --------------------------------------------------------------------------
def _pz_kernel(c_ref, w_ref, vec_ref, out_ref, *, c_len, hid_w, out_w):
    # c_ref  : (1, B, c_len)        f32   this group's full batch
    # w_ref  : (c_len + 2*hid_w, W) bf16  [w1p ; w2p ; whp], zero-padded, lane-dense
    # vec_ref: (8, W)               f32   rows: g1, be1, g2, be2, bh, pad, pad, pad
    # out_ref: (1, B, out_w)        f32   [mean | logvar], lane-dense
    x = c_ref[0].astype(jnp.float32)                                    # (B, c_len)

    # Static sublane slices of the single weight slab (8/16-aligned offsets
    # -> free views); upcast bf16 -> f32 so all math below is f32.
    w1 = w_ref[0:c_len, 0:hid_w].astype(jnp.float32)                    # (c_len, hid_w)
    w2 = w_ref[c_len:c_len + hid_w, 0:hid_w].astype(jnp.float32)        # (hid_w, hid_w)
    wh = w_ref[c_len + hid_w:c_len + 2 * hid_w, 0:out_w].astype(jnp.float32)

    g1, be1 = vec_ref[0:1, 0:hid_w], vec_ref[1:2, 0:hid_w]
    g2, be2 = vec_ref[2:3, 0:hid_w], vec_ref[3:4, 0:hid_w]
    bh = vec_ref[4:5, 0:out_w]

    def bn_leaky(h, gamma, beta):
        # Training-mode BatchNorm1d (biased variance), centered two-pass form.
        # Pad lanes have gamma = beta = 0, so they remain exactly 0.
        mu = jnp.mean(h, axis=0, keepdims=True)
        d = h - mu
        var = jnp.mean(d * d, axis=0, keepdims=True)
        y = d * (gamma * jax.lax.rsqrt(var + BN_EPS)) + beta
        return jnp.maximum(y, LEAKY_SLOPE * y)                           # LeakyReLU(0.01)

    # Linear biases b1/b2 dropped: exactly cancelled by BN mean subtraction.
    h = bn_leaky(jnp.dot(x, w1, preferred_element_type=jnp.float32), g1, be1)
    h = bn_leaky(jnp.dot(h, w2, preferred_element_type=jnp.float32), g2, be2)
    out = jnp.dot(h, wh, preferred_element_type=jnp.float32) + bh        # fused heads
    out_ref[0] = out.astype(out_ref.dtype)


# --------------------------------------------------------------------------
# Parameter packing
# --------------------------------------------------------------------------
def pack_params(p, c_len, z_len):
    """Repack PyTorch-style params into the kernel's fused/padded layout."""
    assert c_len % 8 == 0, "c_len should be a multiple of 8 (16 preferred for bf16)"
    two_z = 2 * z_len
    hid_w = _round_up(c_len, LANE)
    out_w = _round_up(two_z, LANE)
    W = max(hid_w, out_w)

    def pad2(w, rows, cols):
        out = jnp.zeros((rows, cols), jnp.float32)
        return out.at[: w.shape[0], : w.shape[1]].set(w)

    w1p = pad2(p["w1"], c_len, W)                                        # (c_len, W)
    w2p = pad2(p["w2"], hid_w, W)                                        # (hid_w, W)
    whp = pad2(jnp.concatenate([p["wm"], p["wv"]], axis=1), hid_w, W)    # (hid_w, W)
    wslab = jnp.concatenate([w1p, w2p, whp], axis=0).astype(jnp.bfloat16)

    def padv(v):
        out = jnp.zeros((1, W), jnp.float32)
        return out.at[:, : v.shape[1]].set(v)

    vecs = jnp.concatenate(
        [
            padv(p["g1"]), padv(p["be1"]),
            padv(p["g2"]), padv(p["be2"]),
            padv(jnp.concatenate([p["bm"], p["bv"]], axis=1)),
            jnp.zeros((3, W), jnp.float32),
        ],
        axis=0,
    )  # (8, W)

    # b1 / b2 intentionally omitted: cancelled by training-mode BN.
    return dict(wslab=wslab, vecs=vecs, c_len=c_len, z_len=z_len,
                hid_w=hid_w, out_w=out_w)


# --------------------------------------------------------------------------
# Forward wrapper
# --------------------------------------------------------------------------
def p_z_forward(c, packed):
    """p_z forward.  c: (B, c_len) or (G, B, c_len) for G independent groups.

    Returns (mean, logvar) with the same leading layout as c.
    """
    squeeze_group = c.ndim == 2
    if squeeze_group:
        c = c[None]
    G, B, c_len = c.shape
    assert c_len == packed["c_len"]
    z_len, hid_w, out_w = packed["z_len"], packed["hid_w"], packed["out_w"]
    wslab, vecs = packed["wslab"], packed["vecs"]

    kernel = functools.partial(_pz_kernel, c_len=c_len, hid_w=hid_w, out_w=out_w)

    flops = 2 * G * B * (c_len * hid_w + hid_w * hid_w + hid_w * out_w)
    bytes_accessed = int(
        c.size * 4 + wslab.size * 2 + vecs.size * 4 + G * B * out_w * 4
    )
    cost = pl.CostEstimate(
        flops=flops, transcendentals=2 * G * hid_w, bytes_accessed=bytes_accessed
    )

    out = pl.pallas_call(
        kernel,
        out_shape=jax.ShapeDtypeStruct((G, B, out_w), jnp.float32),
        grid=(G,),
        in_specs=[
            pl.BlockSpec((1, B, c_len), lambda g: (g, 0, 0)),   # per-group batch
            pl.BlockSpec(wslab.shape, lambda g: (0, 0)),        # weights, VMEM-resident
            pl.BlockSpec(vecs.shape, lambda g: (0, 0)),         # BN vecs + head bias
        ],
        out_specs=pl.BlockSpec((1, B, out_w), lambda g: (g, 0, 0)),
        compiler_params=pltpu.CompilerParams(
            dimension_semantics=("parallel",)                   # 2nd TC on v7x
        ),
        cost_estimate=cost,
    )(c, wslab, vecs)

    mean = out[..., :z_len]                                     # free views in wrapper
    logvar = out[..., z_len:2 * z_len]
    if squeeze_group:
        mean, logvar = mean[0], logvar[0]
    return mean, logvar


# --------------------------------------------------------------------------
# Init + pure-JAX reference (PyTorch semantics, training-mode BN, with biases)
# --------------------------------------------------------------------------
def init_params(key, c_len, z_len):
    """Deterministic PyTorch-Linear-style init; weights stored as (in, out)."""
    ks = jax.random.split(key, 8)

    def linear(kw, kb, fan_in, fan_out):
        bound = 1.0 / jnp.sqrt(fan_in)
        w = jax.random.uniform(kw, (fan_in, fan_out), jnp.float32, -bound, bound)
        b = jax.random.uniform(kb, (1, fan_out), jnp.float32, -bound, bound)
        return w, b

    w1, b1 = linear(ks[0], ks[1], c_len, c_len)
    w2, b2 = linear(ks[2], ks[3], c_len, c_len)
    wm, bm = linear(ks[4], ks[5], c_len, z_len)
    wv, bv = linear(ks[6], ks[7], c_len, z_len)

    ones = jnp.ones((1, c_len), jnp.float32)
    zeros = jnp.zeros((1, c_len), jnp.float32)
    return dict(
        w1=w1, b1=b1, g1=ones, be1=zeros,
        w2=w2, b2=b2, g2=ones, be2=zeros,
        wm=wm, bm=bm, wv=wv, bv=bv,
    )


def _leaky_relu(x):
    return jnp.where(x > 0, x, LEAKY_SLOPE * x)


def _batchnorm_train(x, gamma, beta):
    mu = jnp.mean(x, axis=0, keepdims=True)
    var = jnp.mean((x - mu) * (x - mu), axis=0, keepdims=True)
    return (x - mu) * jax.lax.rsqrt(var + BN_EPS) * gamma + beta


def p_z_reference(c, p):
    """Pure-JAX reference mirroring the PyTorch forward (training-mode BN, with biases)."""
    hp = jax.lax.Precision.HIGHEST
    h = jnp.dot(c, p["w1"], precision=hp) + p["b1"]
    h = _leaky_relu(_batchnorm_train(h, p["g1"], p["be1"]))
    h = jnp.dot(h, p["w2"], precision=hp) + p["b2"]
    h = _leaky_relu(_batchnorm_train(h, p["g2"], p["be2"]))
    return (jnp.dot(h, p["wm"], precision=hp) + p["bm"],
            jnp.dot(h, p["wv"], precision=hp) + p["bv"])


# --------------------------------------------------------------------------
if __name__ == "__main__":
    C_LEN, Z_LEN = 64, 64     # module defaults
    G, B = 4, 8               # 4 independent groups, batch 8 each

    key = jax.random.PRNGKey(0)
    k_c, k_p = jax.random.split(key)
    c = jax.random.normal(k_c, (G, B, C_LEN), jnp.float32)
    params = init_params(k_p, C_LEN, Z_LEN)
    packed = pack_params(params, C_LEN, Z_LEN)   # one-time repack outside jit

    fwd = jax.jit(functools.partial(p_z_forward, packed=packed))
    mean, logvar = fwd(c)
    jax.block_until_ready((mean, logvar))

    # Reference uses the same bf16-stored weights (upcast back to f32) so the
    # check isolates kernel correctness from weight quantization; Linear
    # biases b1/b2 ARE applied in the reference (kernel relies on BN
    # cancelling them).
    ref_p = dict(params)
    for kname in ("w1", "w2", "wm", "wv"):
        ref_p[kname] = params[kname].astype(jnp.bfloat16).astype(jnp.float32)
    ref_mean, ref_logvar = jax.vmap(lambda cg: p_z_reference(cg, ref_p))(c)

    assert mean.shape == (G, B, Z_LEN) and logvar.shape == (G, B, Z_LEN)
    assert jnp.allclose(mean, ref_mean, atol=1e-3, rtol=1e-3)
    assert jnp.allclose(logvar, ref_logvar, atol=1e-3, rtol=1e-3)

    print("KERNEL_OK")
</pallas_src>

<mosaic_0001>
module attributes {stable_mosaic.version = 11 : i64} {
  func.func @_pz_kernel(%arg0: i32, %arg1: memref<1x8x64xf32, #tpu.memory_space<vmem>>, %arg2: memref<320x128xbf16, #tpu.memory_space<vmem>>, %arg3: memref<8x128xf32, #tpu.memory_space<vmem>>, %arg4: memref<1x8x128xf32, #tpu.memory_space<vmem>>) attributes {dimension_semantics = [#tpu.dimension_semantics<parallel>], iteration_bounds = array<i64: 4>, scalar_prefetch = 0 : i64, scratch_operands = 0 : i64, tpu.core_type = #tpu.core_type<tc>, window_params = [{transform_indices = @transform_0, window_bounds = array<i64: 1, 8, 64>}, {pipeline_mode = #tpu.pipeline_mode<synchronous>, transform_indices = @transform_1, window_bounds = array<i64: 320, 128>}, {pipeline_mode = #tpu.pipeline_mode<synchronous>, transform_indices = @transform_2, window_bounds = array<i64: 8, 128>}, {transform_indices = @transform_3, window_bounds = array<i64: 1, 8, 128>}]} {
    %c0 = arith.constant 0 : index
    %c0_0 = arith.constant 0 : index
    %c0_1 = arith.constant 0 : index
    %0 = vector.load %arg1[%c0, %c0_0, %c0_1] : memref<1x8x64xf32, #tpu.memory_space<vmem>>, vector<1x8x64xf32>
    %1 = vector.shape_cast %0 : vector<1x8x64xf32> to vector<8x64xf32>
    %c0_2 = arith.constant 0 : index
    %c0_3 = arith.constant 0 : index
    %2 = vector.load %arg2[%c0_2, %c0_3] : memref<320x128xbf16, #tpu.memory_space<vmem>>, vector<64x128xbf16>
    %3 = arith.extf %2 : vector<64x128xbf16> to vector<64x128xf32>
    %c64 = arith.constant 64 : index
    %c0_4 = arith.constant 0 : index
    %4 = vector.load %arg2[%c64, %c0_4] : memref<320x128xbf16, #tpu.memory_space<vmem>>, vector<128x128xbf16>
    %5 = arith.extf %4 : vector<128x128xbf16> to vector<128x128xf32>
    %c192 = arith.constant 192 : index
    %c0_5 = arith.constant 0 : index
    %6 = vector.load %arg2[%c192, %c0_5] : memref<320x128xbf16, #tpu.memory_space<vmem>>, vector<128x128xbf16>
    %7 = arith.extf %6 : vector<128x128xbf16> to vector<128x128xf32>
    %c0_6 = arith.constant 0 : index
    %c0_7 = arith.constant 0 : index
    %8 = vector.load %arg3[%c0_6, %c0_7] : memref<8x128xf32, #tpu.memory_space<vmem>>, vector<1x128xf32>
    %c1 = arith.constant 1 : index
    %c0_8 = arith.constant 0 : index
    %9 = vector.load %arg3[%c1, %c0_8] : memref<8x128xf32, #tpu.memory_space<vmem>>, vector<1x128xf32>
    %c2 = arith.constant 2 : index
    %c0_9 = arith.constant 0 : index
    %10 = vector.load %arg3[%c2, %c0_9] : memref<8x128xf32, #tpu.memory_space<vmem>>, vector<1x128xf32>
    %c3 = arith.constant 3 : index
    %c0_10 = arith.constant 0 : index
    %11 = vector.load %arg3[%c3, %c0_10] : memref<8x128xf32, #tpu.memory_space<vmem>>, vector<1x128xf32>
    %c4 = arith.constant 4 : index
    %c0_11 = arith.constant 0 : index
    %12 = vector.load %arg3[%c4, %c0_11] : memref<8x128xf32, #tpu.memory_space<vmem>>, vector<1x128xf32>
    %cst = arith.constant dense<0.000000e+00> : vector<8x128xf32>
    %13 = tpu.matmul %1, %3, %cst {dimension_numbers = #tpu.dot_dimension_numbers<[1], [0], [0], [1], [0, 0, 1, 1], [], []>} : vector<8x64xf32>, vector<64x128xf32>, vector<8x128xf32> -> vector<8x128xf32>
    %cst_12 = arith.constant dense<0.000000e+00> : vector<128xf32>
    %14 = vector.multi_reduction <add>, %13, %cst_12 [0] : vector<8x128xf32> to vector<128xf32>
    %15 = vector.shape_cast %14 : vector<128xf32> to vector<1x128xf32>
    %cst_13 = arith.constant 8.000000e+00 : f32
    %16 = vector.broadcast %cst_13 : f32 to vector<1x128xf32>
    %17 = arith.divf %15, %16 : vector<1x128xf32>
    %18 = vector.broadcast %17 : vector<1x128xf32> to vector<8x128xf32>
    %19 = arith.subf %13, %18 : vector<8x128xf32>
    %20 = arith.mulf %19, %19 : vector<8x128xf32>
    %cst_14 = arith.constant dense<0.000000e+00> : vector<128xf32>
    %21 = vector.multi_reduction <add>, %20, %cst_14 [0] : vector<8x128xf32> to vector<128xf32>
    %22 = vector.shape_cast %21 : vector<128xf32> to vector<1x128xf32>
    %cst_15 = arith.constant 8.000000e+00 : f32
    %23 = vector.broadcast %cst_15 : f32 to vector<1x128xf32>
    %24 = arith.divf %22, %23 : vector<1x128xf32>
    %cst_16 = arith.constant 9.99999974E-6 : f32
    %25 = vector.broadcast %cst_16 : f32 to vector<1x128xf32>
    %26 = arith.addf %24, %25 : vector<1x128xf32>
    %27 = math.rsqrt %26 : vector<1x128xf32>
    %28 = arith.mulf %8, %27 : vector<1x128xf32>
    %29 = vector.broadcast %28 : vector<1x128xf32> to vector<8x128xf32>
    %30 = arith.mulf %19, %29 : vector<8x128xf32>
    %31 = vector.broadcast %9 : vector<1x128xf32> to vector<8x128xf32>
    %32 = arith.addf %30, %31 : vector<8x128xf32>
    %cst_17 = arith.constant 0.00999999977 : f32
    %33 = vector.broadcast %cst_17 : f32 to vector<8x128xf32>
    %34 = arith.mulf %33, %32 : vector<8x128xf32>
    %35 = arith.maximumf %32, %34 : vector<8x128xf32>
    %cst_18 = arith.constant dense<0.000000e+00> : vector<8x128xf32>
    %36 = tpu.matmul %35, %5, %cst_18 {dimension_numbers = #tpu.dot_dimension_numbers<[1], [0], [0], [1], [0, 0, 1, 1], [], []>} : vector<8x128xf32>, vector<128x128xf32>, vector<8x128xf32> -> vector<8x128xf32>
    %cst_19 = arith.constant dense<0.000000e+00> : vector<128xf32>
    %37 = vector.multi_reduction <add>, %36, %cst_19 [0] : vector<8x128xf32> to vector<128xf32>
    %38 = vector.shape_cast %37 : vector<128xf32> to vector<1x128xf32>
    %cst_20 = arith.constant 8.000000e+00 : f32
    %39 = vector.broadcast %cst_20 : f32 to vector<1x128xf32>
    %40 = arith.divf %38, %39 : vector<1x128xf32>
    %41 = vector.broadcast %40 : vector<1x128xf32> to vector<8x128xf32>
    %42 = arith.subf %36, %41 : vector<8x128xf32>
    %43 = arith.mulf %42, %42 : vector<8x128xf32>
    %cst_21 = arith.constant dense<0.000000e+00> : vector<128xf32>
    %44 = vector.multi_reduction <add>, %43, %cst_21 [0] : vector<8x128xf32> to vector<128xf32>
    %45 = vector.shape_cast %44 : vector<128xf32> to vector<1x128xf32>
    %cst_22 = arith.constant 8.000000e+00 : f32
    %46 = vector.broadcast %cst_22 : f32 to vector<1x128xf32>
    %47 = arith.divf %45, %46 : vector<1x128xf32>
    %cst_23 = arith.constant 9.99999974E-6 : f32
    %48 = vector.broadcast %cst_23 : f32 to vector<1x128xf32>
    %49 = arith.addf %47, %48 : vector<1x128xf32>
    %50 = math.rsqrt %49 : vector<1x128xf32>
    %51 = arith.mulf %10, %50 : vector<1x128xf32>
    %52 = vector.broadcast %51 : vector<1x128xf32> to vector<8x128xf32>
    %53 = arith.mulf %42, %52 : vector<8x128xf32>
    %54 = vector.broadcast %11 : vector<1x128xf32> to vector<8x128xf32>
    %55 = arith.addf %53, %54 : vector<8x128xf32>
    %cst_24 = arith.constant 0.00999999977 : f32
    %56 = vector.broadcast %cst_24 : f32 to vector<8x128xf32>
    %57 = arith.mulf %56, %55 : vector<8x128xf32>
    %58 = arith.maximumf %55, %57 : vector<8x128xf32>
    %cst_25 = arith.constant dense<0.000000e+00> : vector<8x128xf32>
    %59 = tpu.matmul %58, %7, %cst_25 {dimension_numbers = #tpu.dot_dimension_numbers<[1], [0], [0], [1], [0, 0, 1, 1], [], []>} : vector<8x128xf32>, vector<128x128xf32>, vector<8x128xf32> -> vector<8x128xf32>
    %60 = vector.broadcast %12 : vector<1x128xf32> to vector<8x128xf32>
    %61 = arith.addf %59, %60 : vector<8x128xf32>
    %c0_26 = arith.constant 0 : index
    %c0_27 = arith.constant 0 : index
    %c0_28 = arith.constant 0 : index
    %62 = vector.load %arg4[%c0_26, %c0_27, %c0_28] : memref<1x8x128xf32, #tpu.memory_space<vmem>>, vector<1x8x128xf32>
    %63 = vector.shape_cast %62 : vector<1x8x128xf32> to vector<8x128xf32>
    %64 = vector.shape_cast %61 : vector<8x128xf32> to vector<1x8x128xf32>
    tpu.vector_store %arg4[%c0_26, %c0_27, %c0_28], %64 {strides = array<i32>} : memref<1x8x128xf32, #tpu.memory_space<vmem>>, vector<1x8x128xf32>,
    return
  }
  func.func @transform_0(%arg0: i32) -> (i32, i32, i32) {
    %c0_i32 = arith.constant 0 : i32
    %c0_i32_0 = arith.constant 0 : i32
    %c0_i32_1 = arith.constant 0 : i32
    return %arg0, %c0_i32, %c0_i32_0 : i32, i32, i32
  }
  func.func @transform_1(%arg0: i32) -> (i32, i32) {
    %c0_i32 = arith.constant 0 : i32
    %c0_i32_0 = arith.constant 0 : i32
    %c0_i32_1 = arith.constant 0 : i32
    return %c0_i32, %c0_i32_0 : i32, i32
  }
  func.func @transform_2(%arg0: i32) -> (i32, i32) {
    %c0_i32 = arith.constant 0 : i32
    %c0_i32_0 = arith.constant 0 : i32
    %c0_i32_1 = arith.constant 0 : i32
    return %c0_i32, %c0_i32_0 : i32, i32
  }
  func.func @transform_3(%arg0: i32) -> (i32, i32, i32) {
    %c0_i32 = arith.constant 0 : i32
    %c0_i32_0 = arith.constant 0 : i32
    %c0_i32_1 = arith.constant 0 : i32
    return %arg0, %c0_i32, %c0_i32_0 : i32, i32, i32
  }
}

</mosaic_0001>

<bundles_post_ra>
// kernel: p_z_forward.1
= control target key start
LH: loop header
LB: loop body
LE: loop exit
PB: predicated region body
PF: predicated region fallthrough
CT: control target
= control target key end

     0   :  { %8 = vsyncpa [#allocation3], 0  ;;  %s1315_s0 = inlined_call_operand.hbm [shape: f32[4,8,64], index: 0, kind: input, shape index: {}]   ;;  %s1316_s1 = inlined_call_operand.hbm [shape: bf16[320,128], index: 1, kind: input, shape index: {}]   ;;  %s1317_s2 = inlined_call_operand.hbm [shape: f32[8,128], index: 2, kind: input, shape index: {}]   ;;  %s1318_s3 = inlined_call_operand.vmem [shape: f32[4,8,128], index: 3, kind: output, shape index: {}]  }
   0x1   :  { %10 = vsyncpa [#allocation3 + $0x1], 0 }
   0x2   :  { %11 = vsyncpa [#allocation5], 0  ;;  %s1129_s12 = smov 0   ;;  %s1131_s13 = smov 0  }
   0x3   :  { %s1133_s14 = smov 0   ;;  %s1135_s15 = smov 0  }
   0x4 LB: > { %s1148_s16 = sadd.s32 4294967295, %s1100_s15   ;;  %p37_p0 = scmp.ne.s32.totalorder %s1092_s13, %s1088_s12  ;;  %s1100_s15 = sphi %s1135_s15, %s1333_s15   ;;  %s1096_s14 = sphi %s1133_s14, %s1332_s14   ;;  %s1092_s13 = sphi %s1131_s13, %s1331_s13   ;;  %s1088_s12 = sphi %s1129_s12, %s1330_s12  }
   0x5   : > { %p1319_p1 = scmp.eq.s32.totalorder %s1148_s16, 0  ;;  %p666_p2 = scmp.ge.s32.totalorder %s1100_s15, 1 }
   0x6   : > { %p116_p3 = scmp.lt.s32.totalorder %s1100_s15, 5  ;;  %s1102_s19 = smov [#allocation4]  }
   0x7   : > { %p1156_p4 = por %p1319_p1, %p37_p0  ;;  %s128_s20 = sshll.u32 %s1102_s19, 4  ;;  %s129_s20 = int_to_ptr.vmem [resolvable:$true] %s128_s20 }
   0x8   : > { %p1160_p5 = pnand %p666_p2, %p116_p3  ;;  %s1103_s22 = smov [#allocation6]  }
   0x9   : > { %s1322_s17 = scalar_select %p1156_p4, 1, 0 }
   0xa   : > { %s1323_s18 = scalar_select %p1160_p5, 1, 0 }
   0xb   : > { %p924_p6 = pneg %p1160_p5  ;;  %s142_s23 = sshll.u32 %s1103_s22, 4  ;;  %s143_s23 = int_to_ptr.vmem [resolvable:$true] %s142_s23 }
   0xc   : > { %s993_s24 = scalar_lea.vmem %s129_s20, 2560  ;;  %p1001_p12 = scmp.lt.s32.totalorder %s129_s20, %s129_s20 }
   0xd   : > { %p1168_p7 = pnand %p924_p6, %p1319_p1  ;;  %p994_p9 = scmp.ne.s32.totalorder %s129_s20, %s993_s24 }
   0xe   : > { %p1002_p13 = scmp.lt.s32.totalorder %s993_s24, %s993_s24 }
   0xf   : > { %p984_p8 = pneg %p1168_p7 }
  0x10   : > { %p1003_p0 = por %p1002_p13, %p1001_p12 }
  0x11   : > { %p996_p10 = pnand %p994_p9, %p984_p8 }
  0x13   : > { %p997_p11 = pneg %p996_p10 }
  0x15   : > { %p1004_p2 = pnand %p1003_p0, %p997_p11 }
  0x17   : > { %1007 = shalt.err (!%p1004_p2)
}
  0x18   : > { %s1104_s25 = smov 64   ;;  %s1105_s26 = smov 4  }
  0x19   : > { %927 = dma.hbm_to_vmem [thread:$0]  (!%p1168_p7), %s1316_s1, 2560, %s129_s20, [#allocation5], %s1104_s25, %s1104_s25, %s1105_s26  }
  0x1a   : > { %s1019_s29 = scalar_lea.vmem %s143_s23, 128  ;;  %p1027_p10 = scmp.lt.s32.totalorder %s143_s23, %s143_s23 }
  0x1b   : > { %p1020_p3 = scmp.ne.s32.totalorder %s143_s23, %s1019_s29  ;;  %p1028_p1 = scmp.lt.s32.totalorder %s1019_s29, %s1019_s29 }
  0x1d   : > { %p1022_p6 = pnand %p1020_p3, %p984_p8  ;;  %p1029_p12 = por %p1028_p1, %p1027_p10 }
  0x1f   : > { %p1023_p9 = pneg %p1022_p6 }
  0x21   : > { %p1030_p11 = pnand %p1029_p12, %p1023_p9 }
  0x23   : > { %1033 = shalt.err (!%p1030_p11)
}
  0x24   : > { %930 = dma.hbm_to_vmem [thread:$0]  (!%p1168_p7), %s1317_s2, 128, %s143_s23, [#allocation5]  }
  0x25   : > { %s1191_s5 = sadd.s32 1, %s1100_s15   ;;  %s24_s6 = sadd.s32 1, %s1096_s14 }
  0x26   : > { %s21_s7 = ssub.s32 %s1100_s15, %s1191_s5  ;;  %p31_p1 = scmp.ne.s32.totalorder %s1096_s14, %s1092_s13 }
  0x27   : > { %p22_p8 = scmp.eq.s32.totalorder %s21_s7, 0  ;;  %p32_p13 = scmp.eq.s32.totalorder %s1100_s15, 0 }
  0x28   : > { %p937_p0 = scmp.lt.s32.totalorder %s1100_s15, 4  ;;  %s153_s8 = sand.u32 1, %s1096_s14  }
  0x29   : > { %s1202_s9 = scalar_select %p22_p8, %s1096_s14, %s24_s6  }
  0x2a   : > { %p33_p2 = por %p32_p13, %p31_p1  ;;  %s670_s10 = sshll.u32 %s153_s8, 3 }
  0x2b   : > { %s671_s11 = sshll.u32 %s1100_s15, 7  ;;  %s157_s21 = scalar_lea.vmem [#allocation2], %s670_s10 }
  0x2c   : > { %s1208_s20 = scalar_lea.hbm %s1315_s0, %s671_s11  ;;  %s164_s22 = sshll.u32 %s157_s21, 4  ;;  %s165_s22 = int_to_ptr.vmem [resolvable:$true] %s164_s22 }
  0x2d   : > { %p1210_p7 = pnand %p937_p0, %p33_p2  ;;  %s154_s24 = scalar_lea.sflag [#allocation3], %s153_s8 }
  0x2e   : > { %s1034_s25 = scalar_lea.hbm %s1208_s20, 128  ;;  %s1039_s27 = scalar_lea.hbm %s1315_s0, 512 }
  0x2f   : > { %p1035_p3 = scmp.ne.s32.totalorder %s1208_s20, %s1034_s25  ;;  %p1036_p6 = pneg %p1210_p7 }
  0x30   : > { %p1040_p12 = scmp.lt.s32.totalorder %s1208_s20, %s1315_s0  ;;  %p1041_p11 = scmp.lt.s32.totalorder %s1039_s27, %s1034_s25 }
  0x31   : > { %p1037_p9 = pnand %p1036_p6, %p1035_p3 }
  0x32   : > { %p1042_p1 = por %p1041_p11, %p1040_p12 }
  0x33   : > { %p1038_p10 = pneg %p1037_p9 }
  0x35   : > { %p1043_p8 = pnand %p1042_p1, %p1038_p10 }
  0x37   : > { %1046 = shalt.err (!%p1043_p8)
}
  0x38   : > { %s1047_s30 = scalar_lea.vmem %s165_s22, 128  ;;  %s1106_s4 = smov [#allocation2]  }
  0x39   : > { %p1048_p13 = scmp.ne.s32.totalorder %s165_s22, %s1047_s30  ;;  %s1052_s6 = sshll.u32 %s1106_s4, 4  ;;  %s1053_s6 = int_to_ptr.vmem [resolvable:$false] %s1052_s6 }
  0x3a   : > { %s1054_s7 = scalar_lea.vmem %s1053_s6, 256  ;;  %p1055_p3 = scmp.lt.s32.totalorder %s165_s22, %s1053_s6 }
  0x3b   : > { %p1050_p0 = pnand %p1048_p13, %p1036_p6  ;;  %p1056_p9 = scmp.lt.s32.totalorder %s1054_s7, %s1047_s30 }
  0x3d   : > { %p1051_p2 = pneg %p1050_p0  ;;  %p1057_p4 = por %p1056_p9, %p1055_p3 }
  0x3f   : > { %p1058_p5 = pnand %p1057_p4, %p1051_p2 }
  0x41   : > { %1061 = shalt.err (!%p1058_p5)
}
  0x42   : > { %934 = dma.hbm_to_vmem [thread:$0]  (!%p1210_p7), %s1208_s20, 128, %s165_s22, %s154_s24  }
  0x43   : > { %p1326_p10 = scmp.ne.s32.totalorder %s1323_s18, 0 }
  0x44   : > { %s175_s8 = sand.u32 (!%p1326_p10), 1, %s1092_s13   ;;  %p1327_p6 = scmp.ne.s32.totalorder (!%p1326_p10), %s1322_s17, 0 }
  0x45   : > { %173 = sbr.rel (%p1326_p10) target bundleno = 798 (0x31e), region = 32  ;;  %s1231_s10 = sshll.u32 (!%p1326_p10), %s175_s8, 3 }
  0x46   : > { %s176_s11 = scalar_lea.sflag (!%p1326_p10), [#allocation3], %s175_s8  ;;  %s179_s12 = scalar_lea.vmem (!%p1326_p10), [#allocation2], %s1231_s10 }
  0x4a   : > { %1079 = dma.done.wait (%p1327_p6), %s176_s11, 128  }
  0x4b   : > { %1081 = vsyncadd (%p1327_p6), %s176_s11, 4294967168  ;;  %p1328_p4 = scmp.eq.s32.totalorder %s1148_s16, 0 }
  0x4d   : > { %1083 = dma.done.wait (%p1328_p4), [#allocation5], 2688   ;;  %p1329_p5 = pmov %p1328_p4 }
  0x4e   : > { %v1107_v0 = vmov 0.0   ;;  %vm1108_vm0 = vmmov 0   ;;  %v765_v1 = vld [vmem:[#allocation4 + $0x18] sm:$0xff]   ;;  %v764_v2 = vld [vmem:[#allocation4 + $0x10] sm:$0xff]   ;;  %v763_v6 = vld [vmem:[#allocation4 + $0x8] sm:$0xff]   ;;  %vm299_vm1 = vcmask 523264   ;;  %v393_v57 = vlaneseq }
  0x4f   : > { %1085 = vsyncadd (%p1329_p5), [#allocation5], 4294964608  ;;  %825 = vmatprep.subr.mxu0 %v1107_v0  ;;  %841 = vmatprep.mubr.msk.f32.mxu0 %vm1108_vm0, %v1107_v0  ;;  %v697_v3 = vunpack.c.l.bf16 %v765_v1  ;;  %v698_v4 = vunpack.c.h.bf16 %v765_v1  ;;  %v694_v5 = vunpack.c.h.bf16 %v764_v2  ;;  %v693_v7 = vunpack.c.l.bf16 %v764_v2  ;;  %v684_v9 = vld [vmem:[#allocation4] sm:$0xff]   ;;  %v213_v13 = vld [vmem:[%s179_s12] sm:$0xff]  ;;  %p209_p7 = scmp.lt.s32.totalorder %s1148_s16, 3 }
  0x50   : > { %844 = vmatprep.subr.mxu1 %v1107_v0  ;;  %876 = vmatprep.mubr.msk.f32.mxu1 %vm1108_vm0, %v1107_v0  ;;  %v690_v8 = vunpack.c.h.bf16 %v763_v6  ;;  %v689_v10 = vunpack.c.l.bf16 %v763_v6  ;;  %v686_v11 = vunpack.c.h.bf16 %v684_v9  ;;  %v685_v12 = vunpack.c.l.bf16 %v684_v9  ;;  %v773_v14 = vld [vmem:[#allocation4 + $0x58] sm:$0xff]   ;;  %v772_v17 = vld [vmem:[#allocation4 + $0x50] sm:$0xff]   ;;  %v771_v20 = vld [vmem:[#allocation4 + $0x48] sm:$0xff]  }
  0x51   : > { %826 = vmatpush3.msra.mxu0 %v698_v4  ;;  %v730_v15 = vunpack.c.h.bf16 %v773_v14  ;;  %v729_v16 = vunpack.c.l.bf16 %v773_v14  ;;  %v726_v18 = vunpack.c.h.bf16 %v772_v17  ;;  %v725_v19 = vunpack.c.l.bf16 %v772_v17  ;;  %v770_v23 = vld [vmem:[#allocation4 + $0x40] sm:$0xff]   ;;  %v769_v26 = vld [vmem:[#allocation4 + $0x38] sm:$0xff]   ;;  %v768_v29 = vld [vmem:[#allocation4 + $0x30] sm:$0xff]   ;;  %s1335_s16 = smov (!%p209_p7, %s1148_s16), 3 }
  0x52   : > { %827 = vmatprep.subr.mxu0 %v1107_v0  ;;  %v722_v21 = vunpack.c.h.bf16 %v771_v20  ;;  %v721_v22 = vunpack.c.l.bf16 %v771_v20  ;;  %v718_v24 = vunpack.c.h.bf16 %v770_v23  ;;  %v717_v25 = vunpack.c.l.bf16 %v770_v23  ;;  %v767_v32 = vld [vmem:[#allocation4 + $0x28] sm:$0xff]   ;;  %v766_v35 = vld [vmem:[#allocation4 + $0x20] sm:$0xff]   ;;  %v781_v6 = vld [vmem:[#allocation4 + $0x98] sm:$0xff]   ;;  %s676_s17 = sshll.u32 %s1335_s16, 3 }
  0x53   : > { %828 = vmatpush3.msra.mxu0 %v697_v3  ;;  %845 = vmatpush3.msra.mxu1 %v730_v15  ;;  %v714_v27 = vunpack.c.h.bf16 %v769_v26  ;;  %v713_v28 = vunpack.c.l.bf16 %v769_v26  ;;  %v710_v30 = vunpack.c.h.bf16 %v768_v29  ;;  %v709_v31 = vunpack.c.l.bf16 %v768_v29  ;;  %v294_v59 = vld [vmem:[#allocation6] sm:$0x1]  ;;  %v678_v1 = vld [vmem:[#allocation6 + $0x1] ss:$0 sm:$0xff]  ;;  %v780_v9 = vld [vmem:[#allocation4 + $0x90] sm:$0xff]   ;;  %s212_s20 = scalar_lea.vmem %s1318_s3, %s676_s17 }
  0x54   : > { %829 = vmatprep.subr.mxu0 %v1107_v0  ;;  %846 = vmatprep.subr.mxu1 %v1107_v0  ;;  %v706_v33 = vunpack.c.h.bf16 %v767_v32  ;;  %v705_v34 = vunpack.c.l.bf16 %v767_v32  ;;  %v702_v36 = vunpack.c.h.bf16 %v766_v35  ;;  %v701_v37 = vunpack.c.l.bf16 %v766_v35  ;;  %v778_v15 = vld [vmem:[#allocation4 + $0x80] sm:$0xff]  }
  0x55   : > { %830 = vmatpush3.msra.mxu0 %v694_v5  ;;  %847 = vmatpush3.msra.mxu1 %v729_v16  ;;  %v1275_v58 = vshrl.u32 %v393_v57, 7  ;;  %v750_v16 = vunpack.c.h.bf16 %v778_v15  ;;  %v749_v17 = vunpack.c.l.bf16 %v778_v15  ;;  %v680_v57 = vld [vmem:[#allocation6 + $0x4] ss:$0 sm:$0xff] }
  0x56   : > { %831 = vmatprep.subr.mxu0 %v1107_v0  ;;  %848 = vmatprep.subr.mxu1 %v1107_v0 }
  0x57   : > { %832 = vmatpush3.msra.mxu0 %v693_v7  ;;  %849 = vmatpush3.msra.mxu1 %v726_v18  ;;  %v395_v60 = vsub.s32 0, %v1275_v58  ;;  %v762_v7 = vunpack.c.h.bf16 %v781_v6  ;;  %v777_v18 = vld [vmem:[#allocation4 + $0x78] sm:$0xff]  }
  0x58   : > { %833 = vmatprep.subr.mxu0 %v1107_v0  ;;  %850 = vmatprep.subr.mxu1 %v1107_v0  ;;  %v745_v20 = vunpack.c.l.bf16 %v777_v18 }
  0x59   : > { %834 = vmatpush3.msra.mxu0 %v690_v8  ;;  %851 = vmatpush3.msra.mxu1 %v725_v19  ;;  %v761_v8 = vunpack.c.l.bf16 %v781_v6  ;;  %v746_v19 = vunpack.c.h.bf16 %v777_v18 }
  0x5a   : > { %835 = vmatprep.subr.mxu0 %v1107_v0  ;;  %852 = vmatprep.subr.mxu1 %v1107_v0 }
  0x5b   : > { %836 = vmatpush3.msra.mxu0 %v689_v10  ;;  %853 = vmatpush3.msra.mxu1 %v722_v21  ;;  %v758_v10 = vunpack.c.h.bf16 %v780_v9  ;;  %v776_v21 = vld [vmem:[#allocation4 + $0x70] sm:$0xff]  }
  0x5c   : > { %837 = vmatprep.subr.mxu0 %v1107_v0  ;;  %854 = vmatprep.subr.mxu1 %v1107_v0  ;;  %v741_v23 = vunpack.c.l.bf16 %v776_v21 }
  0x5d   : > { %838 = vmatpush3.msra.mxu0 %v686_v11  ;;  %855 = vmatpush3.msra.mxu1 %v721_v22  ;;  %v757_v11 = vunpack.c.l.bf16 %v780_v9  ;;  %v742_v22 = vunpack.c.h.bf16 %v776_v21 }
  0x5e   : > { %839 = vmatprep.subr.mxu0 %v1107_v0  ;;  %856 = vmatprep.subr.mxu1 %v1107_v0 }
  0x5f   : > { %840 = vmatpush3.msra.mxu0 %v685_v12  ;;  %857 = vmatpush3.msra.mxu1 %v718_v24  ;;  %v779_v12 = vld [vmem:[#allocation4 + $0x88] sm:$0xff]  }
  0x60   : > { %842 = vmatmul.mubr.msk.f32.vlgmr.msra.gmra.mxu0 %vm299_vm1, %v213_v13  ;;  %879 = vmatprep.subr.mxu0 %v1107_v0  ;;  %v754_v13 = vunpack.c.h.bf16 %v779_v12  ;;  %v753_v14 = vunpack.c.l.bf16 %v779_v12  ;;  %v775_v24 = vld [vmem:[#allocation4 + $0x68] sm:$0xff]  }
  0x61   : > { %911 = vmatprep.mubr.msk.f32.mxu0 %vm1108_vm0, %v1107_v0  ;;  %858 = vmatprep.subr.mxu1 %v1107_v0  ;;  %v737_v26 = vunpack.c.l.bf16 %v775_v24 }
  0x62   : > { %859 = vmatpush3.msra.mxu1 %v717_v25  ;;  %880 = vmatpush3.msra.mxu0 %v762_v7  ;;  %v738_v25 = vunpack.c.h.bf16 %v775_v24 }
  0x63   : > { %860 = vmatprep.subr.mxu1 %v1107_v0  ;;  %881 = vmatprep.subr.mxu0 %v1107_v0 }
  0x64   : > { %861 = vmatpush3.msra.mxu1 %v714_v27  ;;  %882 = vmatpush3.msra.mxu0 %v761_v8  ;;  %v774_v27 = vld [vmem:[#allocation4 + $0x60] sm:$0xff]  }
  0x65   : > { %862 = vmatprep.subr.mxu1 %v1107_v0  ;;  %883 = vmatprep.subr.mxu0 %v1107_v0  ;;  %v733_v29 = vunpack.c.l.bf16 %v774_v27 }
  0x66   : > { %863 = vmatpush3.msra.mxu1 %v713_v28  ;;  %884 = vmatpush3.msra.mxu0 %v758_v10  ;;  %v734_v28 = vunpack.c.h.bf16 %v774_v27 }
  0x67   : > { %864 = vmatprep.subr.mxu1 %v1107_v0  ;;  %885 = vmatprep.subr.mxu0 %v1107_v0 }
  0x68   : > { %865 = vmatpush3.msra.mxu1 %v710_v30  ;;  %886 = vmatpush3.msra.mxu0 %v757_v11 }
  0x69   : > { %866 = vmatprep.subr.mxu1 %v1107_v0  ;;  %887 = vmatprep.subr.mxu0 %v1107_v0 }
  0x6a   : > { %867 = vmatpush3.msra.mxu1 %v709_v31  ;;  %888 = vmatpush3.msra.mxu0 %v754_v13 }
  0x6b   : > { %868 = vmatprep.subr.mxu1 %v1107_v0  ;;  %889 = vmatprep.subr.mxu0 %v1107_v0 }
  0x6c   : > { %869 = vmatpush3.msra.mxu1 %v706_v33  ;;  %890 = vmatpush3.msra.mxu0 %v753_v14 }
  0x6d   : > { %870 = vmatprep.subr.mxu1 %v1107_v0  ;;  %891 = vmatprep.subr.mxu0 %v1107_v0 }
  0x6e   : > { %871 = vmatpush3.msra.mxu1 %v705_v34  ;;  %892 = vmatpush3.msra.mxu0 %v750_v16 }
  0x6f   : > { %872 = vmatprep.subr.mxu1 %v1107_v0  ;;  %893 = vmatprep.subr.mxu0 %v1107_v0 }
  0x70   : > { %873 = vmatpush3.msra.mxu1 %v702_v36  ;;  %894 = vmatpush3.msra.mxu0 %v749_v17 }
  0x71   : > { %874 = vmatprep.subr.mxu1 %v1107_v0  ;;  %895 = vmatprep.subr.mxu0 %v1107_v0 }
  0x72   : > { %875 = vmatpush3.msra.mxu1 %v701_v37  ;;  %896 = vmatpush3.msra.mxu0 %v746_v19 }
  0x73   : > { %897 = vmatprep.subr.mxu0 %v1107_v0 }
  0x74   : > { %898 = vmatpush3.msra.mxu0 %v745_v20 }
  0x75   : > { %899 = vmatprep.subr.mxu0 %v1107_v0 }
  0x76   : > { %900 = vmatpush3.msra.mxu0 %v742_v22 }
  0x77   : > { %901 = vmatprep.subr.mxu0 %v1107_v0 }
  0x78   : > { %902 = vmatpush3.msra.mxu0 %v741_v23 }
  0x79   : > { %903 = vmatprep.subr.mxu0 %v1107_v0 }
  0x7a   : > { %904 = vmatpush3.msra.mxu0 %v738_v25 }
  0x7b   : > { %905 = vmatprep.subr.mxu0 %v1107_v0 }
  0x7c   : > { %906 = vmatpush3.msra.mxu0 %v737_v26 }
  0x7d   : > { %907 = vmatprep.subr.mxu0 %v1107_v0 }
  0x7e   : > { %908 = vmatpush3.msra.mxu0 %v734_v28 }
  0x7f   : > { %909 = vmatprep.subr.mxu0 %v1107_v0 }
  0x80   : > { %910 = vmatpush3.msra.mxu0 %v733_v29 }
 0x120   : > { %v369_v38 = vpop.f32.mrf.mxu0 }
 0x121   : > { %v373_v39 = vrot.slane %v369_v38, 4 }
 0x122   : > { %v843_v40 = vpop.f32.mrf.mxu0 }
 0x123   : > { %v374_v41 = vadd.f32 %v373_v39, %v369_v38 }
 0x125   : > { %v375_v42 = vrot.slane %v374_v41, 2 }
 0x127   : > { %v376_v43 = vadd.f32 %v375_v42, %v374_v41 }
 0x129   : > { %v377_v44 = vrot.slane %v376_v43, 1 }
 0x12b   : > { %v378_v45 = vadd.f32 %v377_v44, %v376_v43 }
 0x12d   : > { %v380_v46 = vmul.f32 0.125, %v378_v45 }
 0x12f   : > { %v381_v47 = vsub.f32 %v369_v38, %v380_v46 }
 0x131   : > { %v382_v48 = vmul.f32 %v381_v47, %v381_v47 }
 0x133   : > { %v383_v49 = vrot.slane %v382_v48, 4 }
 0x135   : > { %v384_v50 = vadd.f32 %v383_v49, %v382_v48  ;;  %v296_v48 = vld [vmem:[#allocation6 + $0x2] sm:$0x1] }
 0x137   : > { %v385_v51 = vrot.slane %v384_v50, 2 }
 0x139   : > { %v386_v52 = vadd.f32 %v385_v51, %v384_v50 }
 0x13b   : > { %v387_v53 = vrot.slane %v386_v52, 1 }
 0x13d   : > { %v388_v54 = vadd.f32 %v387_v53, %v386_v52  ;;  %v679_v52 = vld [vmem:[#allocation6 + $0x3] ss:$0 sm:$0xff] }
 0x13f   : > { %v389_v55 = vmul.f32 0.125, %v388_v54 }
 0x141   : > { %v390_v56 = vadd.f32 1e-05, %v389_v55 }
 0x143   : > { %978 = vrsqrt.f32 %v390_v56 }
 0x150   : > { %v979_v61 = vpop.eup %978 }
 0x151   : > { %v392_v62 = vmul.f32 %v979_v61, %v294_v59 }
 0x153   : > { %v396_v63 = vrot.slane %v392_v62, %v395_v60 }
 0x155   : > { %v397_v2 = vmul.f32 %v396_v63, %v381_v47 }
 0x157   : > { %v402_v3 = vadd.f32 %v678_v1, %v397_v2 }
 0x159   : > { %v403_v4 = vmul.f32 0.01, %v402_v3 }
 0x15b   : > { %v404_v5 = vmax.f32 %v402_v3, %v403_v4 }
 0x15d   : > { %877 = vmatmul.mubr.f32.vlgmr.msra.gmra.mxu1 %v404_v5 }
 0x21d   : > { %v471_v30 = vpop.f32.mrf.mxu1 }
 0x21e   : > { %v475_v31 = vrot.slane %v471_v30, 4 }
 0x21f   : > { %v878_v32 = vpop.f32.mrf.mxu1 }
 0x220   : > { %v476_v33 = vadd.f32 %v475_v31, %v471_v30 }
 0x222   : > { %v477_v34 = vrot.slane %v476_v33, 2 }
 0x224   : > { %v478_v35 = vadd.f32 %v477_v34, %v476_v33 }
 0x226   : > { %v479_v36 = vrot.slane %v478_v35, 1 }
 0x228   : > { %v480_v37 = vadd.f32 %v479_v36, %v478_v35 }
 0x22a   : > { %v481_v38 = vmul.f32 0.125, %v480_v37 }
 0x22c   : > { %v482_v39 = vsub.f32 %v471_v30, %v481_v38 }
 0x22e   : > { %v483_v40 = vmul.f32 %v482_v39, %v482_v39 }
 0x230   : > { %v484_v41 = vrot.slane %v483_v40, 4 }
 0x232   : > { %v485_v42 = vadd.f32 %v484_v41, %v483_v40 }
 0x234   : > { %v486_v43 = vrot.slane %v485_v42, 2 }
 0x236   : > { %v487_v44 = vadd.f32 %v486_v43, %v485_v42 }
 0x238   : > { %v488_v45 = vrot.slane %v487_v44, 1 }
 0x23a   : > { %v489_v0 = vadd.f32 %v488_v45, %v487_v44 }
 0x23c   : > { %v490_v46 = vmul.f32 0.125, %v489_v0 }
 0x23e   : > { %v491_v47 = vadd.f32 1e-05, %v490_v46 }
 0x240   : > { %980 = vrsqrt.f32 %v491_v47 }
 0x24d   : > { %v981_v49 = vpop.eup %980 }
 0x24e   : > { %v493_v50 = vmul.f32 %v981_v49, %v296_v48 }
 0x250   : > { %v497_v51 = vrot.slane %v493_v50, %v395_v60 }
 0x252   : > { %v498_v53 = vmul.f32 %v497_v51, %v482_v39 }
 0x254   : > { %v503_v54 = vadd.f32 %v679_v52, %v498_v53 }
 0x256   : > { %v504_v55 = vmul.f32 0.01, %v503_v54 }
 0x258   : > { %v505_v56 = vmax.f32 %v503_v54, %v504_v55 }
 0x25a   : > { %912 = vmatmul.mubr.f32.vlgmr.msra.gmra.mxu0 %v505_v56 }
 0x31a   : > { %v576_v59 = vpop.f32.mrf.mxu0 }
 0x31b   : > { %v577_v61 = vadd.f32 %v680_v57, %v576_v59 }
 0x31c   : > { %v913_v62 = vpop.f32.mrf.mxu0 }
 0x31d   : > { %580 = vst [vmem:[%s212_s20] sm:$0xff] %v577_v61 }
 0x31e PF: > { %p14_p12 = scmp.ge.s32.totalorder %s1191_s5, 6   ;;  %s1330_s12 = smov %s1092_s13 }
 0x31f   : > { %s1331_s13 = smov %s1096_s14  ;;  %s1332_s14 = smov %s1202_s9 }
 0x320   : > { %s1333_s15 = smov %s1191_s5  ;;  %16 = sbr.rel (!%p14_p12) target bundleno = 4 (0x4), region = 80 }
 0x325   :  { %600 = vsyncpa [#allocation3], 1 }
 0x326   :  { %602 = vsyncpa [#allocation3 + $0x1], 1 }
 0x327   :  { %603 = vsyncpa [#allocation5], 1 }

</bundles_post_ra>
